<compile_context>
chip_gen: v7x
topology: tpu7x:2x2x1
jax: 0.10.0
libtpu: 0.0.40
codegen_flags: <defaults>
</compile_context>

<pallas_src>
import functools

import jax
import jax.numpy as jnp
from jax.experimental import pallas as pl
from jax.experimental.pallas import tpu as pltpu

_LANE = 128
_TB_ALIGN = 16  # sublane multiple that is safe for bf16-packed x tiles


def _round_up(x, m):
    return ((x + m - 1) // m) * m


def _cdiv(a, b):
    return -(-a // b)


def _soft_clamp(x):
    # Reproduces the PyTorch soft_clamp exactly (its low/high args are ignored).
    return 5.0 + 0.5 * (200.0 - 5.0) * (jnp.tanh(x) + 1.0)


def _mixed_gauss_kernel(*refs, n_layers, layer_out_pads, n_comp, action_dim,
                        out_dim):
    """One batch tile: full MLP (bf16 MXU matmuls, f32 accum) + packed head.

    refs = (x, W0, ..., W_{L-1}, b_all, out)
      x     : (TB, state_pad)          bf16
      W_i   : (in_pad_i, out_pad_i)    bf16 (all dims multiples of 128)
      b_all : (n_layers, max_out_pad)  f32, row i = zero-padded bias of layer i
      out   : (TB, out_cols)           f32, lane-dense packed [cat | mus | stds]
    """
    x_ref = refs[0]
    w_refs = refs[1:1 + n_layers]
    b_ref = refs[1 + n_layers]
    out_ref = refs[2 + n_layers]

    h = x_ref[...]  # bf16
    for i in range(n_layers):
        w = w_refs[i][...]
        b = b_ref[i:i + 1, :layer_out_pads[i]]      # (1, out_pad_i), lane-aligned
        z = jnp.dot(h, w, preferred_element_type=jnp.float32) + b
        if i < n_layers - 1:
            h = jnp.maximum(z, 0.0).astype(jnp.bfloat16)   # ReLU, back to bf16
        else:
            h = z                                          # final pre-acts, f32

    # --- head: full-width (TB, out_cols) with lane masks ---
    k = n_comp * action_dim
    col = jax.lax.broadcasted_iota(jnp.int32, h.shape, 1)
    is_cat = col < n_comp
    is_std = jnp.logical_and(col >= n_comp + k, col < out_dim)

    # softmax over the first n_comp lanes: mask inside the exponent, exact divide
    logits = jnp.where(is_cat, h, -jnp.inf)
    m = jnp.max(logits, axis=-1, keepdims=True)
    e = jnp.exp(logits - m)                 # exp(-inf) = 0 on non-cat lanes
    cat = e / jnp.sum(e, axis=-1, keepdims=True)

    sc = _soft_clamp(h)    # soft-clamped mus / log_stds, range (5, 200)
    std = jnp.exp(sc)      # may overflow to +inf in f32, exactly as in PyTorch

    out_ref[...] = jnp.where(is_cat, cat, jnp.where(is_std, std, sc))


def mixed_gauss_mlp_forward(s, params, *, n_comp, action_dim, batch_tile=2048):
    """Returns (cat, mus, stds) parametrizing the MixtureSameFamily dist.

    s: shape (B, ...); flattened from dim 1 (matches torch.flatten).
    params: list of (W, b) tuples, W: (in, out) f32, b: (out,) f32.
    """
    B = s.shape[0]
    x = s.reshape(B, -1).astype(jnp.float32)
    state_dim = x.shape[1]

    n_layers = len(params)
    out_dim = params[-1][0].shape[1]
    assert out_dim == 2 * n_comp * action_dim + n_comp

    # --- pad every matmul dim to a multiple of 128 and cast weights to bf16 ---
    state_pad = _round_up(state_dim, _LANE)
    prev_pad = state_pad
    weights, in_pads, out_pads = [], [], []
    for (w, _) in params:
        w = w.astype(jnp.float32)
        d_in, d_out = w.shape
        out_pad = _round_up(d_out, _LANE)
        w = jnp.pad(w, ((0, prev_pad - d_in), (0, out_pad - d_out)))
        weights.append(w.astype(jnp.bfloat16))   # MXU-native dtype
        in_pads.append(prev_pad)
        out_pads.append(out_pad)
        prev_pad = out_pad
    out_cols = out_pads[-1]

    # Pack all (zero-padded) biases into one f32 operand (single DMA / buffer).
    max_out = max(out_pads)
    b_all = jnp.stack(
        [jnp.pad(b.astype(jnp.float32), (0, max_out - b.shape[0]))
         for (_, b) in params], axis=0)          # (n_layers, max_out)

    # --- VMEM budget -> batch tile (re-derived per TPU generation) ---
    try:
        phys_vmem = int(pltpu.get_tpu_info().vmem_capacity_bytes)
    except Exception:
        phys_vmem = 64 * 1024 * 1024             # v7x-safe fallback
    vmem_budget = min(int(phys_vmem * 0.75), 100 * 1024 * 1024)

    param_bytes = sum(int(w.size) * 2 for w in weights) + int(b_all.size) * 4
    act_per_row = max(6 * in_pads[i] + 4 * out_pads[i] for i in range(n_layers))
    per_row = (2 * state_pad * 2       # x stream, 2 buffers, bf16
               + 2 * out_cols * 4      # out stream, 2 buffers, f32
               + act_per_row           # live activations (f32 + bf16 copies)
               + 6 * out_cols * 4)     # head temporaries, f32
    avail = vmem_budget - param_bytes - 2 * 1024 * 1024
    tb_cap = max(_TB_ALIGN, (avail // per_row) // _TB_ALIGN * _TB_ALIGN)

    # Keep >= 2 grid steps on large batches so ("parallel",) can shard across
    # both TensorCores on v7x (harmless no-op on v5e/v6e).
    b_align = _round_up(B, _TB_ALIGN)
    half_cap = _round_up(_cdiv(b_align, 2), _TB_ALIGN)
    tb = max(_TB_ALIGN, min(batch_tile, tb_cap, half_cap))

    b_pad = _round_up(B, tb)
    x = jnp.pad(x.astype(jnp.bfloat16),
                ((0, b_pad - B), (0, state_pad - state_dim)))
    grid = (b_pad // tb,)

    kernel = functools.partial(
        _mixed_gauss_kernel,
        n_layers=n_layers,
        layer_out_pads=tuple(out_pads),
        n_comp=n_comp,
        action_dim=action_dim,
        out_dim=out_dim,
    )

    def _build(single_buffer_params):
        def resident(arr):
            # Parameters: same block index every grid step -> VMEM-resident.
            if single_buffer_params:
                return pl.BlockSpec(arr.shape, lambda i: (0, 0),
                                    pipeline_mode=pl.Buffered(1))
            return pl.BlockSpec(arr.shape, lambda i: (0, 0))

        in_specs = [pl.BlockSpec((tb, state_pad), lambda i: (i, 0))]
        in_specs += [resident(w) for w in weights]
        in_specs += [resident(b_all)]
        return pl.pallas_call(
            kernel,
            grid=grid,
            in_specs=in_specs,
            out_specs=pl.BlockSpec((tb, out_cols), lambda i: (i, 0)),
            out_shape=jax.ShapeDtypeStruct((b_pad, out_cols), jnp.float32),
            compiler_params=pltpu.CompilerParams(
                dimension_semantics=("parallel",),
                vmem_limit_bytes=int(vmem_budget),
            ),
        )(x, *weights, b_all)

    try:
        packed = _build(True)
    except Exception:
        # Fallback if this JAX build rejects pl.Buffered(1) on resident inputs.
        packed = _build(False)

    packed = packed[:B]
    k = n_comp * action_dim
    cat = packed[:, :n_comp]
    mus = packed[:, n_comp:n_comp + k].reshape(-1, n_comp, action_dim)
    # torch: stds = log_stds.exp().transpose(0, 1); stds.reshape(-1, n_comp, a)
    stds = jnp.transpose(packed[:, n_comp + k:out_dim], (1, 0)).reshape(
        -1, n_comp, action_dim)
    return cat, mus, stds
    # TODO(synk): torch.distributions.MixtureSameFamily has no Pallas/JAX-array
    # equivalent inside a kernel; parameters (cat, mus, stds) are returned.


def _reference_forward(s, params, *, n_comp, action_dim):
    """Pure-JAX reference mirroring the PyTorch forward (bf16 matmuls, f32 math)."""
    B = s.shape[0]
    h = s.reshape(B, -1).astype(jnp.float32)
    n_layers = len(params)
    for i, (w, b) in enumerate(params):
        h = jnp.dot(h.astype(jnp.bfloat16), w.astype(jnp.bfloat16),
                    preferred_element_type=jnp.float32) + b.astype(jnp.float32)
        if i < n_layers - 1:
            h = jnp.maximum(h, 0.0)
    k = n_comp * action_dim
    cat = jax.nn.softmax(h[:, :n_comp], axis=-1)
    mus = _soft_clamp(h[:, n_comp:n_comp + k]).reshape(-1, n_comp, action_dim)
    stds = jnp.transpose(jnp.exp(_soft_clamp(h[:, n_comp + k:])), (1, 0)).reshape(
        -1, n_comp, action_dim)
    return cat, mus, stds


def init_params(key, state_dim, width, depth, out_dim):
    """Deterministic MLP params: depth hidden ReLU layers + linear output."""
    dims = [state_dim] + [width] * depth + [out_dim]
    params = []
    for i in range(len(dims) - 1):
        key, kw, kb = jax.random.split(key, 3)
        fan_in = dims[i]
        w = jax.random.normal(kw, (dims[i], dims[i + 1]), jnp.float32) / jnp.sqrt(
            jnp.float32(fan_in))
        b = 0.01 * jax.random.normal(kb, (dims[i + 1],), jnp.float32)
        params.append((w, b))
    return params


if __name__ == "__main__":
    # Small, module-consistent shapes.
    n_comp = 3
    action_dim = 2
    width = 32
    depth = 2
    B = 2
    s_shape = (B, 4, 4, 4)                      # flattened state_dim = 64
    state_dim = 4 * 4 * 4
    out_dim = 2 * n_comp * action_dim + n_comp  # 15

    key = jax.random.PRNGKey(0)
    key, ks = jax.random.split(key)
    s = jax.random.normal(ks, s_shape, jnp.float32)
    params = init_params(key, state_dim, width, depth, out_dim)

    cat, mus, stds = mixed_gauss_mlp_forward(
        s, params, n_comp=n_comp, action_dim=action_dim)
    jax.block_until_ready((cat, mus, stds))

    # Shape / normalization sanity checks (exact divide in-kernel).
    assert cat.shape == (B, n_comp)
    assert mus.shape == (B, n_comp, action_dim)
    assert stds.shape == (B, n_comp, action_dim)
    assert bool(jnp.allclose(jnp.sum(cat, axis=-1), 1.0, atol=1e-5))

    # Compare against a pure-JAX reference (same bf16 matmul precision).
    cat_r, mus_r, stds_r = _reference_forward(
        s, params, n_comp=n_comp, action_dim=action_dim)
    assert bool(jnp.allclose(cat, cat_r, rtol=1e-3, atol=2e-3))
    assert bool(jnp.allclose(mus, mus_r, rtol=1e-3, atol=1e-2))
    # stds = exp(soft_clamp(.)) overflows f32 to +inf by construction (verbatim
    # PyTorch behavior); compare finite entries and accept both-huge as a match.
    big = jnp.float32(1e30)
    both_big = jnp.logical_and(stds > big, stds_r > big)
    close = jnp.isclose(stds, stds_r, rtol=5e-2, atol=1e-3)
    assert bool(jnp.all(jnp.logical_or(close, both_big)))

    print("KERNEL_OK")
</pallas_src>

<mosaic_0001>
module attributes {stable_mosaic.version = 11 : i64} {
  func.func @_mixed_gauss_kernel(%arg0: i32, %arg1: memref<16x128xbf16, #tpu.memory_space<vmem>>, %arg2: memref<128x128xbf16, #tpu.memory_space<vmem>>, %arg3: memref<128x128xbf16, #tpu.memory_space<vmem>>, %arg4: memref<128x128xbf16, #tpu.memory_space<vmem>>, %arg5: memref<3x128xf32, #tpu.memory_space<vmem>>, %arg6: memref<16x128xf32, #tpu.memory_space<vmem>>) attributes {dimension_semantics = [#tpu.dimension_semantics<parallel>], iteration_bounds = array<i64: 1>, scalar_prefetch = 0 : i64, scratch_operands = 0 : i64, tpu.core_type = #tpu.core_type<tc>, window_params = [{transform_indices = @transform_0, window_bounds = array<i64: 16, 128>}, {pipeline_mode = #tpu.pipeline_mode<synchronous>, transform_indices = @transform_1, window_bounds = array<i64: 128, 128>}, {pipeline_mode = #tpu.pipeline_mode<synchronous>, transform_indices = @transform_2, window_bounds = array<i64: 128, 128>}, {pipeline_mode = #tpu.pipeline_mode<synchronous>, transform_indices = @transform_3, window_bounds = array<i64: 128, 128>}, {pipeline_mode = #tpu.pipeline_mode<synchronous>, transform_indices = @transform_4, window_bounds = array<i64: 3, 128>}, {transform_indices = @transform_5, window_bounds = array<i64: 16, 128>}]} {
    %c0 = arith.constant 0 : index
    %c0_0 = arith.constant 0 : index
    %0 = vector.load %arg1[%c0, %c0_0] : memref<16x128xbf16, #tpu.memory_space<vmem>>, vector<16x128xbf16>
    %c0_1 = arith.constant 0 : index
    %c0_2 = arith.constant 0 : index
    %1 = vector.load %arg2[%c0_1, %c0_2] : memref<128x128xbf16, #tpu.memory_space<vmem>>, vector<128x128xbf16>
    %c0_3 = arith.constant 0 : index
    %c0_4 = arith.constant 0 : index
    %2 = vector.load %arg5[%c0_3, %c0_4] : memref<3x128xf32, #tpu.memory_space<vmem>>, vector<1x128xf32>
    %cst = arith.constant dense<0.000000e+00> : vector<16x128xf32>
    %3 = tpu.matmul %0, %1, %cst {dimension_numbers = #tpu.dot_dimension_numbers<[1], [0], [0], [1], [0, 0, 1, 1], [], []>} : vector<16x128xbf16>, vector<128x128xbf16>, vector<16x128xf32> -> vector<16x128xf32>
    %4 = vector.broadcast %2 : vector<1x128xf32> to vector<16x128xf32>
    %5 = arith.addf %3, %4 : vector<16x128xf32>
    %cst_5 = arith.constant 0.000000e+00 : f32
    %6 = vector.broadcast %cst_5 : f32 to vector<16x128xf32>
    %7 = arith.maximumf %5, %6 : vector<16x128xf32>
    %8 = arith.truncf %7 : vector<16x128xf32> to vector<16x128xbf16>
    %c0_6 = arith.constant 0 : index
    %c0_7 = arith.constant 0 : index
    %9 = vector.load %arg3[%c0_6, %c0_7] : memref<128x128xbf16, #tpu.memory_space<vmem>>, vector<128x128xbf16>
    %c1 = arith.constant 1 : index
    %c0_8 = arith.constant 0 : index
    %10 = vector.load %arg5[%c1, %c0_8] : memref<3x128xf32, #tpu.memory_space<vmem>>, vector<1x128xf32>
    %cst_9 = arith.constant dense<0.000000e+00> : vector<16x128xf32>
    %11 = tpu.matmul %8, %9, %cst_9 {dimension_numbers = #tpu.dot_dimension_numbers<[1], [0], [0], [1], [0, 0, 1, 1], [], []>} : vector<16x128xbf16>, vector<128x128xbf16>, vector<16x128xf32> -> vector<16x128xf32>
    %12 = vector.broadcast %10 : vector<1x128xf32> to vector<16x128xf32>
    %13 = arith.addf %11, %12 : vector<16x128xf32>
    %cst_10 = arith.constant 0.000000e+00 : f32
    %14 = vector.broadcast %cst_10 : f32 to vector<16x128xf32>
    %15 = arith.maximumf %13, %14 : vector<16x128xf32>
    %16 = arith.truncf %15 : vector<16x128xf32> to vector<16x128xbf16>
    %c0_11 = arith.constant 0 : index
    %c0_12 = arith.constant 0 : index
    %17 = vector.load %arg4[%c0_11, %c0_12] : memref<128x128xbf16, #tpu.memory_space<vmem>>, vector<128x128xbf16>
    %c2 = arith.constant 2 : index
    %c0_13 = arith.constant 0 : index
    %18 = vector.load %arg5[%c2, %c0_13] : memref<3x128xf32, #tpu.memory_space<vmem>>, vector<1x128xf32>
    %cst_14 = arith.constant dense<0.000000e+00> : vector<16x128xf32>
    %19 = tpu.matmul %16, %17, %cst_14 {dimension_numbers = #tpu.dot_dimension_numbers<[1], [0], [0], [1], [0, 0, 1, 1], [], []>} : vector<16x128xbf16>, vector<128x128xbf16>, vector<16x128xf32> -> vector<16x128xf32>
    %20 = vector.broadcast %18 : vector<1x128xf32> to vector<16x128xf32>
    %21 = arith.addf %19, %20 : vector<16x128xf32>
    %22 = tpu.iota {dimensions = array<i32: 1>} : vector<16x128xi32>
    %c3_i32 = arith.constant 3 : i32
    %23 = vector.broadcast %c3_i32 : i32 to vector<16x128xi32>
    %24 = arith.cmpi slt, %22, %23 : vector<16x128xi32>
    %c9_i32 = arith.constant 9 : i32
    %25 = vector.broadcast %c9_i32 : i32 to vector<16x128xi32>
    %26 = arith.cmpi sge, %22, %25 : vector<16x128xi32>
    %c15_i32 = arith.constant 15 : i32
    %27 = vector.broadcast %c15_i32 : i32 to vector<16x128xi32>
    %28 = arith.cmpi slt, %22, %27 : vector<16x128xi32>
    %29 = arith.andi %26, %28 : vector<16x128xi1>
    %cst_15 = arith.constant 0xFF800000 : f32
    %30 = vector.broadcast %cst_15 : f32 to vector<16x128xf32>
    %31 = arith.select %24, %21, %30 : vector<16x128xi1>, vector<16x128xf32>
    %cst_16 = arith.constant dense<0xFF800000> : vector<16xf32>
    %32 = vector.multi_reduction <maximumf>, %31, %cst_16 [1] : vector<16x128xf32> to vector<16xf32>
    %33 = vector.shape_cast %32 : vector<16xf32> to vector<16x1xf32>
    %34 = vector.broadcast %33 : vector<16x1xf32> to vector<16x128xf32>
    %35 = arith.subf %31, %34 : vector<16x128xf32>
    %36 = math.exp %35 : vector<16x128xf32>
    %cst_17 = arith.constant dense<0.000000e+00> : vector<16xf32>
    %37 = vector.multi_reduction <add>, %36, %cst_17 [1] : vector<16x128xf32> to vector<16xf32>
    %38 = vector.shape_cast %37 : vector<16xf32> to vector<16x1xf32>
    %39 = vector.broadcast %38 : vector<16x1xf32> to vector<16x128xf32>
    %40 = arith.divf %36, %39 : vector<16x128xf32>
    %41 = math.tanh %21 : vector<16x128xf32>
    %cst_18 = arith.constant 1.000000e+00 : f32
    %42 = vector.broadcast %cst_18 : f32 to vector<16x128xf32>
    %43 = arith.addf %41, %42 : vector<16x128xf32>
    %cst_19 = arith.constant 9.750000e+01 : f32
    %44 = vector.broadcast %cst_19 : f32 to vector<16x128xf32>
    %45 = arith.mulf %44, %43 : vector<16x128xf32>
    %cst_20 = arith.constant 5.000000e+00 : f32
    %46 = vector.broadcast %cst_20 : f32 to vector<16x128xf32>
    %47 = arith.addf %46, %45 : vector<16x128xf32>
    %48 = math.exp %47 : vector<16x128xf32>
    %49 = arith.select %29, %48, %47 : vector<16x128xi1>, vector<16x128xf32>
    %50 = arith.select %24, %40, %49 : vector<16x128xi1>, vector<16x128xf32>
    %c0_21 = arith.constant 0 : index
    %c0_22 = arith.constant 0 : index
    %51 = vector.load %arg6[%c0_21, %c0_22] : memref<16x128xf32, #tpu.memory_space<vmem>>, vector<16x128xf32>
    tpu.vector_store %arg6[%c0_21, %c0_22], %50 {strides = array<i32>} : memref<16x128xf32, #tpu.memory_space<vmem>>, vector<16x128xf32>,
    return
  }
  func.func @transform_0(%arg0: i32) -> (i32, i32) {
    %c0_i32 = arith.constant 0 : i32
    %c0_i32_0 = arith.constant 0 : i32
    return %arg0, %c0_i32 : i32, i32
  }
  func.func @transform_1(%arg0: i32) -> (i32, i32) {
    %c0_i32 = arith.constant 0 : i32
    %c0_i32_0 = arith.constant 0 : i32
    %c0_i32_1 = arith.constant 0 : i32
    return %c0_i32, %c0_i32_0 : i32, i32
  }
  func.func @transform_2(%arg0: i32) -> (i32, i32) {
    %c0_i32 = arith.constant 0 : i32
    %c0_i32_0 = arith.constant 0 : i32
    %c0_i32_1 = arith.constant 0 : i32
    return %c0_i32, %c0_i32_0 : i32, i32
  }
  func.func @transform_3(%arg0: i32) -> (i32, i32) {
    %c0_i32 = arith.constant 0 : i32
    %c0_i32_0 = arith.constant 0 : i32
    %c0_i32_1 = arith.constant 0 : i32
    return %c0_i32, %c0_i32_0 : i32, i32
  }
  func.func @transform_4(%arg0: i32) -> (i32, i32) {
    %c0_i32 = arith.constant 0 : i32
    %c0_i32_0 = arith.constant 0 : i32
    %c0_i32_1 = arith.constant 0 : i32
    return %c0_i32, %c0_i32_0 : i32, i32
  }
  func.func @transform_5(%arg0: i32) -> (i32, i32) {
    %c0_i32 = arith.constant 0 : i32
    %c0_i32_0 = arith.constant 0 : i32
    return %arg0, %c0_i32 : i32, i32
  }
}

module attributes {stable_mosaic.version = 11 : i64} {
  func.func @_mixed_gauss_kernel(%arg0: i32, %arg1: memref<16x128xbf16, #tpu.memory_space<vmem>>, %arg2: memref<128x128xbf16, #tpu.memory_space<vmem>>, %arg3: memref<128x128xbf16, #tpu.memory_space<vmem>>, %arg4: memref<128x128xbf16, #tpu.memory_space<vmem>>, %arg5: memref<3x128xf32, #tpu.memory_space<vmem>>, %arg6: memref<16x128xf32, #tpu.memory_space<vmem>>) attributes {dimension_semantics = [#tpu.dimension_semantics<parallel>], iteration_bounds = array<i64: 1>, scalar_prefetch = 0 : i64, scratch_operands = 0 : i64, tpu.core_type = #tpu.core_type<tc>, window_params = [{transform_indices = @transform_0, window_bounds = array<i64: 16, 128>}, {pipeline_mode = #tpu.pipeline_mode<synchronous>, transform_indices = @transform_1, window_bounds = array<i64: 128, 128>}, {pipeline_mode = #tpu.pipeline_mode<synchronous>, transform_indices = @transform_2, window_bounds = array<i64: 128, 128>}, {pipeline_mode = #tpu.pipeline_mode<synchronous>, transform_indices = @transform_3, window_bounds = array<i64: 128, 128>}, {pipeline_mode = #tpu.pipeline_mode<synchronous>, transform_indices = @transform_4, window_bounds = array<i64: 3, 128>}, {transform_indices = @transform_5, window_bounds = array<i64: 16, 128>}]} {
    %c0 = arith.constant 0 : index
    %c0_0 = arith.constant 0 : index
    %0 = vector.load %arg1[%c0, %c0_0] : memref<16x128xbf16, #tpu.memory_space<vmem>>, vector<16x128xbf16>
    %c0_1 = arith.constant 0 : index
    %c0_2 = arith.constant 0 : index
    %1 = vector.load %arg2[%c0_1, %c0_2] : memref<128x128xbf16, #tpu.memory_space<vmem>>, vector<128x128xbf16>
    %c0_3 = arith.constant 0 : index
    %c0_4 = arith.constant 0 : index
    %2 = vector.load %arg5[%c0_3, %c0_4] : memref<3x128xf32, #tpu.memory_space<vmem>>, vector<1x128xf32>
    %cst = arith.constant dense<0.000000e+00> : vector<16x128xf32>
    %3 = tpu.matmul %0, %1, %cst {dimension_numbers = #tpu.dot_dimension_numbers<[1], [0], [0], [1], [0, 0, 1, 1], [], []>} : vector<16x128xbf16>, vector<128x128xbf16>, vector<16x128xf32> -> vector<16x128xf32>
    %4 = vector.broadcast %2 : vector<1x128xf32> to vector<16x128xf32>
    %5 = arith.addf %3, %4 : vector<16x128xf32>
    %cst_5 = arith.constant 0.000000e+00 : f32
    %6 = vector.broadcast %cst_5 : f32 to vector<16x128xf32>
    %7 = arith.maximumf %5, %6 : vector<16x128xf32>
    %8 = arith.truncf %7 : vector<16x128xf32> to vector<16x128xbf16>
    %c0_6 = arith.constant 0 : index
    %c0_7 = arith.constant 0 : index
    %9 = vector.load %arg3[%c0_6, %c0_7] : memref<128x128xbf16, #tpu.memory_space<vmem>>, vector<128x128xbf16>
    %c1 = arith.constant 1 : index
    %c0_8 = arith.constant 0 : index
    %10 = vector.load %arg5[%c1, %c0_8] : memref<3x128xf32, #tpu.memory_space<vmem>>, vector<1x128xf32>
    %cst_9 = arith.constant dense<0.000000e+00> : vector<16x128xf32>
    %11 = tpu.matmul %8, %9, %cst_9 {dimension_numbers = #tpu.dot_dimension_numbers<[1], [0], [0], [1], [0, 0, 1, 1], [], []>} : vector<16x128xbf16>, vector<128x128xbf16>, vector<16x128xf32> -> vector<16x128xf32>
    %12 = vector.broadcast %10 : vector<1x128xf32> to vector<16x128xf32>
    %13 = arith.addf %11, %12 : vector<16x128xf32>
    %cst_10 = arith.constant 0.000000e+00 : f32
    %14 = vector.broadcast %cst_10 : f32 to vector<16x128xf32>
    %15 = arith.maximumf %13, %14 : vector<16x128xf32>
    %16 = arith.truncf %15 : vector<16x128xf32> to vector<16x128xbf16>
    %c0_11 = arith.constant 0 : index
    %c0_12 = arith.constant 0 : index
    %17 = vector.load %arg4[%c0_11, %c0_12] : memref<128x128xbf16, #tpu.memory_space<vmem>>, vector<128x128xbf16>
    %c2 = arith.constant 2 : index
    %c0_13 = arith.constant 0 : index
    %18 = vector.load %arg5[%c2, %c0_13] : memref<3x128xf32, #tpu.memory_space<vmem>>, vector<1x128xf32>
    %cst_14 = arith.constant dense<0.000000e+00> : vector<16x128xf32>
    %19 = tpu.matmul %16, %17, %cst_14 {dimension_numbers = #tpu.dot_dimension_numbers<[1], [0], [0], [1], [0, 0, 1, 1], [], []>} : vector<16x128xbf16>, vector<128x128xbf16>, vector<16x128xf32> -> vector<16x128xf32>
    %20 = vector.broadcast %18 : vector<1x128xf32> to vector<16x128xf32>
    %21 = arith.addf %19, %20 : vector<16x128xf32>
    %22 = tpu.iota {dimensions = array<i32: 1>} : vector<16x128xi32>
    %c3_i32 = arith.constant 3 : i32
    %23 = vector.broadcast %c3_i32 : i32 to vector<16x128xi32>
    %24 = arith.cmpi slt, %22, %23 : vector<16x128xi32>
    %c9_i32 = arith.constant 9 : i32
    %25 = vector.broadcast %c9_i32 : i32 to vector<16x128xi32>
    %26 = arith.cmpi sge, %22, %25 : vector<16x128xi32>
    %c15_i32 = arith.constant 15 : i32
    %27 = vector.broadcast %c15_i32 : i32 to vector<16x128xi32>
    %28 = arith.cmpi slt, %22, %27 : vector<16x128xi32>
    %29 = arith.andi %26, %28 : vector<16x128xi1>
    %cst_15 = arith.constant 0xFF800000 : f32
    %30 = vector.broadcast %cst_15 : f32 to vector<16x128xf32>
    %31 = arith.select %24, %21, %30 : vector<16x128xi1>, vector<16x128xf32>
    %cst_16 = arith.constant dense<0xFF800000> : vector<16xf32>
    %32 = vector.multi_reduction <maximumf>, %31, %cst_16 [1] : vector<16x128xf32> to vector<16xf32>
    %33 = vector.shape_cast %32 : vector<16xf32> to vector<16x1xf32>
    %34 = vector.broadcast %33 : vector<16x1xf32> to vector<16x128xf32>
    %35 = arith.subf %31, %34 : vector<16x128xf32>
    %36 = math.exp %35 : vector<16x128xf32>
    %cst_17 = arith.constant dense<0.000000e+00> : vector<16xf32>
    %37 = vector.multi_reduction <add>, %36, %cst_17 [1] : vector<16x128xf32> to vector<16xf32>
    %38 = vector.shape_cast %37 : vector<16xf32> to vector<16x1xf32>
    %39 = vector.broadcast %38 : vector<16x1xf32> to vector<16x128xf32>
    %40 = arith.divf %36, %39 : vector<16x128xf32>
    %41 = math.tanh %21 : vector<16x128xf32>
    %cst_18 = arith.constant 1.000000e+00 : f32
    %42 = vector.broadcast %cst_18 : f32 to vector<16x128xf32>
    %43 = arith.addf %41, %42 : vector<16x128xf32>
    %cst_19 = arith.constant 9.750000e+01 : f32
    %44 = vector.broadcast %cst_19 : f32 to vector<16x128xf32>
    %45 = arith.mulf %44, %43 : vector<16x128xf32>
    %cst_20 = arith.constant 5.000000e+00 : f32
    %46 = vector.broadcast %cst_20 : f32 to vector<16x128xf32>
    %47 = arith.addf %46, %45 : vector<16x128xf32>
    %48 = math.exp %47 : vector<16x128xf32>
    %49 = arith.select %29, %48, %47 : vector<16x128xi1>, vector<16x128xf32>
    %50 = arith.select %24, %40, %49 : vector<16x128xi1>, vector<16x128xf32>
    %c0_21 = arith.constant 0 : index
    %c0_22 = arith.constant 0 : index
    %51 = vector.load %arg6[%c0_21, %c0_22] : memref<16x128xf32, #tpu.memory_space<vmem>>, vector<16x128xf32>
    tpu.vector_store %arg6[%c0_21, %c0_22], %50 {strides = array<i32>} : memref<16x128xf32, #tpu.memory_space<vmem>>, vector<16x128xf32>,
    return
  }
  func.func @transform_0(%arg0: i32) -> (i32, i32) {
    %c0_i32 = arith.constant 0 : i32
    %c0_i32_0 = arith.constant 0 : i32
    return %arg0, %c0_i32 : i32, i32
  }
  func.func @transform_1(%arg0: i32) -> (i32, i32) {
    %c0_i32 = arith.constant 0 : i32
    %c0_i32_0 = arith.constant 0 : i32
    %c0_i32_1 = arith.constant 0 : i32
    return %c0_i32, %c0_i32_0 : i32, i32
  }
  func.func @transform_2(%arg0: i32) -> (i32, i32) {
    %c0_i32 = arith.constant 0 : i32
    %c0_i32_0 = arith.constant 0 : i32
    %c0_i32_1 = arith.constant 0 : i32
    return %c0_i32, %c0_i32_0 : i32, i32
  }
  func.func @transform_3(%arg0: i32) -> (i32, i32) {
    %c0_i32 = arith.constant 0 : i32
    %c0_i32_0 = arith.constant 0 : i32
    %c0_i32_1 = arith.constant 0 : i32
    return %c0_i32, %c0_i32_0 : i32, i32
  }
  func.func @transform_4(%arg0: i32) -> (i32, i32) {
    %c0_i32 = arith.constant 0 : i32
    %c0_i32_0 = arith.constant 0 : i32
    %c0_i32_1 = arith.constant 0 : i32
    return %c0_i32, %c0_i32_0 : i32, i32
  }
  func.func @transform_5(%arg0: i32) -> (i32, i32) {
    %c0_i32 = arith.constant 0 : i32
    %c0_i32_0 = arith.constant 0 : i32
    return %arg0, %c0_i32 : i32, i32
  }
}

</mosaic_0001>

<bundles_post_ra>
// kernel: tpu_custom_call.1
= control target key start
LH: loop header
LB: loop body
LE: loop exit
PB: predicated region body
PF: predicated region fallthrough
CT: control target
= control target key end

     0   :  { %10 = vsyncpa [#allocation3], 0  ;;  %s947_s0 = inlined_call_operand.hbm [shape: bf16[16,128], index: 0, kind: input, shape index: {}]   ;;  %s948_s1 = inlined_call_operand.hbm [shape: bf16[128,128], index: 1, kind: input, shape index: {}]   ;;  %s949_s2 = inlined_call_operand.hbm [shape: bf16[128,128], index: 2, kind: input, shape index: {}]   ;;  %s950_s3 = inlined_call_operand.hbm [shape: bf16[128,128], index: 3, kind: input, shape index: {}]   ;;  %s951_s4 = inlined_call_operand.vmem [shape: f32[3,128], index: 4, kind: input, shape index: {}]   ;;  %s952_s5 = inlined_call_operand.hbm [shape: f32[16,128], index: 5, kind: output, shape index: {}]  }
   0x1   :  { %11 = vsyncpa [#allocation6], 0 }
   0x2   :  { %12 = vsyncpa [#allocation9], 0 }
   0x3   :  { %13 = vsyncpa [#allocation4], 0  ;;  %s769_s18 = smov [#allocation5]   ;;  %s770_s20 = smov [#allocation2]  }
   0x4   :  { %s31_s19 = sshll.u32 %s769_s18, 4  ;;  %s19_s21 = sshll.u32 %s770_s20, 4  ;;  %s32_s19 = int_to_ptr.vmem [resolvable:$true] %s31_s19  ;;  %s810_s21 = int_to_ptr.vmem [resolvable:$true] %s19_s21 }
   0x5   :  { %s651_s24 = scalar_lea.hbm %s948_s1, 1024 }
   0x6   :  { %p652_p0 = scmp.ne.s32.totalorder %s948_s1, %s651_s24  ;;  %p655_p1 = scmp.lt.u32.totalorder %s651_s24, %s948_s1 }
   0x8   :  { %p657_p2 = pnand %p655_p1, %p652_p0 }
   0xa   :  { %660 = shalt.err (!%p657_p2)
}
   0xb   :  { %s661_s29 = scalar_lea.vmem %s32_s19, 1024  ;;  %p666_p4 = scmp.lt.s32.totalorder %s32_s19, %s32_s19 }
   0xc   :  { %p662_p3 = scmp.ne.s32.totalorder %s32_s19, %s661_s29  ;;  %p667_p5 = scmp.lt.s32.totalorder %s661_s29, %s661_s29 }
   0xe   :  { %p668_p6 = por %p667_p5, %p666_p4 }
  0x10   :  { %p669_p7 = pnand %p668_p6, %p662_p3 }
  0x12   :  { %672 = shalt.err (!%p669_p7)
}
  0x13   :  { %s771_s30 = smov 64   ;;  %s772_s6 = smov 4  }
  0x14   :  { %37 = dma.hbm_to_vmem [thread:$0]  %s948_s1, 1024, %s32_s19, [#allocation6], %s771_s30, %s771_s30, %s772_s6  }
  0x15   :  { %s673_s11 = scalar_lea.hbm %s947_s0, 128 }
  0x16   :  { %p674_p8 = scmp.ne.s32.totalorder %s947_s0, %s673_s11  ;;  %p677_p9 = scmp.lt.u32.totalorder %s673_s11, %s947_s0 }
  0x18   :  { %p679_p10 = pnand %p677_p9, %p674_p8 }
  0x1a   :  { %682 = shalt.err (!%p679_p10)
}
  0x1b   :  { %s683_s16 = scalar_lea.vmem %s810_s21, 128  ;;  %p688_p12 = scmp.lt.s32.totalorder %s810_s21, %s810_s21 }
  0x1c   :  { %p684_p11 = scmp.ne.s32.totalorder %s810_s21, %s683_s16  ;;  %p689_p13 = scmp.lt.s32.totalorder %s683_s16, %s683_s16 }
  0x1e   :  { %p690_p0 = por %p689_p13, %p688_p12 }
  0x20   :  { %p691_p1 = pnand %p690_p0, %p684_p11 }
  0x22   :  { %694 = shalt.err (!%p691_p1)
}
  0x23   :  { %25 = dma.hbm_to_vmem [thread:$0]  %s947_s0, 128, %s810_s21, [#allocation3], %s771_s30, %s771_s30, %s772_s6  }
  0x24   :  { %s773_s18 = smov [#allocation7]   ;;  %s774_s20 = smov [#allocation8]  }
  0x25   :  { %s43_s19 = sshll.u32 %s773_s18, 4  ;;  %s55_s22 = sshll.u32 %s774_s20, 4  ;;  %s44_s19 = int_to_ptr.vmem [resolvable:$true] %s43_s19  ;;  %s847_s22 = int_to_ptr.vmem [resolvable:$true] %s55_s22 }
  0x26   :  { %s695_s25 = scalar_lea.hbm %s949_s2, 1024 }
  0x27   :  { %p696_p2 = scmp.ne.s32.totalorder %s949_s2, %s695_s25  ;;  %p699_p3 = scmp.lt.u32.totalorder %s695_s25, %s949_s2 }
  0x29   :  { %p701_p4 = pnand %p699_p3, %p696_p2 }
  0x2b   :  { %704 = shalt.err (!%p701_p4)
}
  0x2c   :  { %s705_s0 = scalar_lea.vmem %s44_s19, 1024  ;;  %p710_p6 = scmp.lt.s32.totalorder %s44_s19, %s44_s19 }
  0x2d   :  { %p706_p5 = scmp.ne.s32.totalorder %s44_s19, %s705_s0  ;;  %p711_p7 = scmp.lt.s32.totalorder %s705_s0, %s705_s0 }
  0x2f   :  { %p712_p8 = por %p711_p7, %p710_p6 }
  0x31   :  { %p713_p9 = pnand %p712_p8, %p706_p5 }
  0x33   :  { %716 = shalt.err (!%p713_p9)
}
  0x34   :  { %49 = dma.hbm_to_vmem [thread:$0]  %s949_s2, 1024, %s44_s19, [#allocation6], %s771_s30, %s771_s30, %s772_s6  }
  0x35   :  { %s717_s10 = scalar_lea.hbm %s950_s3, 1024 }
  0x36   :  { %p718_p10 = scmp.ne.s32.totalorder %s950_s3, %s717_s10  ;;  %p721_p11 = scmp.lt.u32.totalorder %s717_s10, %s950_s3 }
  0x38   :  { %p723_p12 = pnand %p721_p11, %p718_p10 }
  0x3a   :  { %726 = shalt.err (!%p723_p12)
}
  0x3b   :  { %s727_s15 = scalar_lea.vmem %s847_s22, 1024  ;;  %p732_p0 = scmp.lt.s32.totalorder %s847_s22, %s847_s22 }
  0x3c   :  { %p728_p13 = scmp.ne.s32.totalorder %s847_s22, %s727_s15  ;;  %p733_p1 = scmp.lt.s32.totalorder %s727_s15, %s727_s15 }
  0x3e   :  { %p734_p2 = por %p733_p1, %p732_p0 }
  0x40   :  { %p735_p3 = pnand %p734_p2, %p728_p13 }
  0x42   :  { %738 = shalt.err (!%p735_p3)
}
  0x43   :  { %61 = dma.hbm_to_vmem [thread:$0]  %s950_s3, 1024, %s847_s22, [#allocation9], %s771_s30, %s771_s30, %s772_s6  }
  0x44   :  { %761 = dma.done.wait [#allocation3], 128  }
  0x45   :  { %762 = vsyncadd [#allocation3], 4294967168 }
  0x46   :  { %763 = dma.done.wait [#allocation6], 2048  }
  0x47   :  { %764 = vsyncadd [#allocation6], 4294965248 }
  0x48   :  { %765 = dma.done.wait [#allocation9], 1024  }
  0x49   :  { %766 = vsyncadd [#allocation9], 4294966272  ;;  %v775_v0 = vmov 0.0   ;;  %vm776_vm0 = vmmov 0   ;;  %v610_v1 = vld [vmem:[#allocation5] sm:$0xff]   ;;  %v611_v2 = vld [vmem:[#allocation5 + $0x8] sm:$0xff]   ;;  %v421_v46 = vlaneseq }
  0x4a   :  { %539 = vmatprep.subr.bf16.mxu0 %v775_v0  ;;  %555 = vmatprep.mubr.msk.bf16.mxu0 %vm776_vm0, %v775_v0  ;;  %v612_v3 = vld [vmem:[#allocation5 + $0x10] sm:$0xff]   ;;  %v619_v4 = vld [vmem:[#allocation7] sm:$0xff]   ;;  %v613_v5 = vld [vmem:[#allocation5 + $0x18] sm:$0xff]  }
  0x4b   :  { %559 = vmatprep.subr.bf16.mxu1 %v775_v0  ;;  %575 = vmatprep.mubr.msk.bf16.mxu1 %vm776_vm0, %v775_v0  ;;  %v620_v6 = vld [vmem:[#allocation7 + $0x8] sm:$0xff]   ;;  %v614_v7 = vld [vmem:[#allocation5 + $0x20] sm:$0xff]   ;;  %v621_v8 = vld [vmem:[#allocation7 + $0x10] sm:$0xff]   ;;  %v422_v47 = vand.u32 127, %v421_v46 }
  0x4c   :  { %540 = vmatpush3.bf16.msra.mxu0 %v610_v1  ;;  %560 = vmatpush3.bf16.msra.mxu1 %v619_v4  ;;  %v615_v9 = vld [vmem:[#allocation5 + $0x28] sm:$0xff]   ;;  %v622_v10 = vld [vmem:[#allocation7 + $0x18] sm:$0xff]   ;;  %v616_v11 = vld [vmem:[#allocation5 + $0x30] sm:$0xff]  }
  0x4d   :  { %541 = vmatprep.subr.bf16.mxu0 %v775_v0  ;;  %561 = vmatprep.subr.bf16.mxu1 %v775_v0  ;;  %v623_v12 = vld [vmem:[#allocation7 + $0x20] sm:$0xff]   ;;  %v617_v13 = vld [vmem:[#allocation5 + $0x38] sm:$0xff]   ;;  %v624_v14 = vld [vmem:[#allocation7 + $0x28] sm:$0xff]   ;;  %vm423_vm1 = vcmp.lt.s32.totalorder %v422_v47, 3  ;;  %vm424_vm2 = vcmp.ge.s32.totalorder %v422_v47, 9  ;;  %vm425_vm3 = vcmp.lt.s32.totalorder %v422_v47, 15 }
  0x4e   :  { %v618_v15 = vld [vmem:[#allocation2] sm:$0xff]   ;;  %v625_v16 = vld [vmem:[#allocation7 + $0x30] sm:$0xff]   ;;  %v627_v18 = vld [vmem:[#allocation8] sm:$0xff]  }
  0x4f   :  { %v626_v17 = vld [vmem:[#allocation7 + $0x38] sm:$0xff]   ;;  %v628_v19 = vld [vmem:[#allocation8 + $0x8] sm:$0xff]   ;;  %v629_v20 = vld [vmem:[#allocation8 + $0x10] sm:$0xff]  }
  0x50   :  { %542 = vmatpush3.bf16.msra.mxu0 %v611_v2  ;;  %562 = vmatpush3.bf16.msra.mxu1 %v620_v6  ;;  %v630_v21 = vld [vmem:[#allocation8 + $0x18] sm:$0xff]   ;;  %v631_v22 = vld [vmem:[#allocation8 + $0x20] sm:$0xff]   ;;  %v632_v23 = vld [vmem:[#allocation8 + $0x28] sm:$0xff]  }
  0x51   :  { %543 = vmatprep.subr.bf16.mxu0 %v775_v0  ;;  %563 = vmatprep.subr.bf16.mxu1 %v775_v0  ;;  %v484_v24 = vld [vmem:[%s951_s4] ss:$0 sm:$0xff]  ;;  %v633_v34 = vld [vmem:[#allocation8 + $0x30] sm:$0xff]   ;;  %v494_v36 = vld [vmem:[%s951_s4 + $0x1] ss:$0 sm:$0xff] }
  0x52   :  { %v634_v35 = vld [vmem:[#allocation8 + $0x38] sm:$0xff]   ;;  %vm925_vm4 = vmand %vm424_vm2, %vm425_vm3 }
  0x53   :  { %v503_v48 = vld [vmem:[%s951_s4 + $0x2] ss:$0 sm:$0xff]  ;;  %s777_s4 = smov [#allocation10]  }
  0x54   :  { %544 = vmatpush3.bf16.msra.mxu0 %v612_v3  ;;  %564 = vmatpush3.bf16.msra.mxu1 %v621_v8  ;;  %s470_s19 = sshll.u32 %s777_s4, 4  ;;  %s471_s19 = int_to_ptr.vmem [resolvable:$true] %s470_s19 }
  0x55   :  { %545 = vmatprep.subr.bf16.mxu0 %v775_v0  ;;  %565 = vmatprep.subr.bf16.mxu1 %v775_v0  ;;  %s739_s20 = scalar_lea.vmem %s471_s19, 256  ;;  %p744_p5 = scmp.lt.s32.totalorder %s471_s19, %s471_s19 }
  0x56   :  { %p740_p4 = scmp.ne.s32.totalorder %s471_s19, %s739_s20  ;;  %p745_p6 = scmp.lt.s32.totalorder %s739_s20, %s739_s20 }
  0x58   :  { %546 = vmatpush3.bf16.msra.mxu0 %v613_v5  ;;  %566 = vmatpush3.bf16.msra.mxu1 %v622_v10  ;;  %p746_p7 = por %p745_p6, %p744_p5 }
  0x59   :  { %547 = vmatprep.subr.bf16.mxu0 %v775_v0  ;;  %567 = vmatprep.subr.bf16.mxu1 %v775_v0 }
  0x5a   :  { %p747_p8 = pnand %p746_p7, %p740_p4 }
  0x5c   :  { %548 = vmatpush3.bf16.msra.mxu0 %v614_v7  ;;  %568 = vmatpush3.bf16.msra.mxu1 %v623_v12 }
  0x5d   :  { %549 = vmatprep.subr.bf16.mxu0 %v775_v0  ;;  %569 = vmatprep.subr.bf16.mxu1 %v775_v0 }
  0x60   :  { %550 = vmatpush3.bf16.msra.mxu0 %v615_v9  ;;  %570 = vmatpush3.bf16.msra.mxu1 %v624_v14 }
  0x61   :  { %551 = vmatprep.subr.bf16.mxu0 %v775_v0  ;;  %571 = vmatprep.subr.bf16.mxu1 %v775_v0 }
  0x64   :  { %552 = vmatpush3.bf16.msra.mxu0 %v616_v11  ;;  %572 = vmatpush3.bf16.msra.mxu1 %v625_v16 }
  0x65   :  { %553 = vmatprep.subr.bf16.mxu0 %v775_v0  ;;  %573 = vmatprep.subr.bf16.mxu1 %v775_v0 }
  0x68   :  { %554 = vmatpush3.bf16.msra.mxu0 %v617_v13  ;;  %574 = vmatpush3.bf16.msra.mxu1 %v626_v17 }
  0x69   :  { %579 = vmatprep.subr.bf16.mxu0 %v775_v0 }
  0x6b   :  { %556 = vmatmul.mubr.bf16.vlgmr.msra.gmra.mrb[0].mxu0 %v618_v15 }
  0x6c   :  { %595 = vmatprep.mubr.msk.bf16.mxu0 %vm776_vm0, %v775_v0  ;;  %580 = vmatpush3.bf16.msra.mxu0 %v627_v18 }
  0x6d   :  { %581 = vmatprep.subr.bf16.mxu0 %v775_v0 }
  0x70   :  { %582 = vmatpush3.bf16.msra.mxu0 %v628_v19 }
  0x71   :  { %583 = vmatprep.subr.bf16.mxu0 %v775_v0 }
  0x74   :  { %584 = vmatpush3.bf16.msra.mxu0 %v629_v20 }
  0x75   :  { %585 = vmatprep.subr.bf16.mxu0 %v775_v0 }
  0x78   :  { %586 = vmatpush3.bf16.msra.mxu0 %v630_v21 }
  0x79   :  { %587 = vmatprep.subr.bf16.mxu0 %v775_v0 }
  0x7c   :  { %588 = vmatpush3.bf16.msra.mxu0 %v631_v22 }
  0x7d   :  { %589 = vmatprep.subr.bf16.mxu0 %v775_v0 }
  0x80   :  { %590 = vmatpush3.bf16.msra.mxu0 %v632_v23 }
  0x81   :  { %591 = vmatprep.subr.bf16.mxu0 %v775_v0 }
  0x84   :  { %592 = vmatpush3.bf16.msra.mxu0 %v633_v34 }
  0x85   :  { %593 = vmatprep.subr.bf16.mxu0 %v775_v0 }
  0x88   :  { %594 = vmatpush3.bf16.msra.mxu0 %v634_v35 }
 0x13e   :  { %v188_v25 = vpop.f32.mrb[0].mxu0 }
 0x13f   :  { %v189_v26 = vadd.f32 %v484_v24, %v188_v25  ;;  %v557_v27 = vpop.f32.mrb[1].mxu0 }
 0x140   :  { %v191_v28 = vpop.f32.mrb[2].mxu0 }
 0x141   :  { %v192_v29 = vadd.f32 %v484_v24, %v191_v28  ;;  %v558_v30 = vpop.f32.mrb[3].mxu0  ;;  %v195_v31 = vmax.f32 %v189_v26, 0.0 }
 0x143   :  { %v196_v32 = vmax.f32 %v192_v29, 0.0 }
 0x145   :  { %v197_v33 = vpack.c.bf16 %v196_v32, %v195_v31 }
 0x147   :  { %576 = vmatmul.mubr.bf16.vlgmr.msra.gmra.mrb[0].mxu1 %v197_v33 }
 0x21a   :  { %v301_v37 = vpop.f32.mrb[0].mxu1 }
 0x21b   :  { %v302_v38 = vadd.f32 %v494_v36, %v301_v37  ;;  %v577_v39 = vpop.f32.mrb[1].mxu1 }
 0x21c   :  { %v304_v40 = vpop.f32.mrb[2].mxu1 }
 0x21d   :  { %v305_v41 = vadd.f32 %v494_v36, %v304_v40  ;;  %v578_v42 = vpop.f32.mrb[3].mxu1  ;;  %v308_v43 = vmax.f32 %v302_v38, 0.0 }
 0x21f   :  { %v309_v44 = vmax.f32 %v305_v41, 0.0 }
 0x221   :  { %v310_v45 = vpack.c.bf16 %v309_v44, %v308_v43 }
 0x223   :  { %596 = vmatmul.mubr.bf16.vlgmr.msra.gmra.mrb[4].mxu0 %v310_v45 }
 0x2f6   :  { %v414_v49 = vpop.f32.mrb[4].mxu0 }
 0x2f7   :  { %v415_v50 = vadd.f32 %v503_v48, %v414_v49  ;;  %v597_v51 = vpop.f32.mrb[5].mxu0 }
 0x2f8   :  { %v417_v52 = vpop.f32.mrb[6].mxu0 }
 0x2f9   :  { %635 = vtanh.f32 %v415_v50  ;;  %v418_v53 = vadd.f32 %v503_v48, %v417_v52  ;;  %v598_v54 = vpop.f32.mrb[7].mxu0  ;;  %v427_v55 = vsel %vm423_vm1, %v415_v50, -inf }
 0x2fa   :  { %429 = vmax.xlane.f32.xlu0 %v427_v55 }
 0x2fb   :  { %637 = vtanh.f32 %v418_v53  ;;  %v428_v56 = vsel %vm423_vm1, %v418_v53, -inf }
 0x2fe   :  { %431 = vmax.xlane.f32.xlu0 %v428_v56 }
 0x303   :  { %v636_v57 = vpop.eup %635 }
 0x304   :  { %v449_v58 = vadd.f32 1.0, %v636_v57 }
 0x305   :  { %v638_v59 = vpop.eup %637 }
 0x306   :  { %v451_v60 = vmul.f32 97.5, %v449_v58  ;;  %v450_v61 = vadd.f32 1.0, %v638_v59 }
 0x308   :  { %v453_v62 = vadd.f32 5.0, %v451_v60  ;;  %v452_v63 = vmul.f32 97.5, %v450_v61 }
 0x30a   :  { %v455_v0 = vmul.f32 1.442695, %v453_v62  ;;  %v454_v1 = vadd.f32 5.0, %v452_v63 }
 0x30c   :  { %639 = vpow2.f32 %v455_v0  ;;  %v457_v2 = vmul.f32 1.442695, %v454_v1 }
 0x30e   :  { %641 = vpow2.f32 %v457_v2 }
 0x316   :  { %v640_v4 = vpop.eup %639 }
 0x317   :  { %v459_v5 = vsel %vm925_vm4, %v640_v4, %v453_v62 }
 0x318   :  { %v642_v6 = vpop.eup %641 }
 0x319   :  { %v460_v7 = vsel %vm925_vm4, %v642_v6, %v454_v1 }
 0x387   :  { %v430_v8 = vpop.xlane.xlu0 %429 }
 0x388   :  { %v433_v9 = vsub.f32 %v427_v55, %v430_v8 }
 0x38a   :  { %v435_v10 = vmul.f32 1.442695, %v433_v9 }
 0x38b   :  { %v432_v11 = vpop.xlane.xlu0 %431 }
 0x38c   :  { %643 = vpow2.f32 %v435_v10  ;;  %v434_v12 = vsub.f32 %v428_v56, %v432_v11 }
 0x38e   :  { %v437_v13 = vmul.f32 1.442695, %v434_v12 }
 0x390   :  { %645 = vpow2.f32 %v437_v13 }
 0x396   :  { %v644_v14 = vpop.eup %643 }
 0x397   :  { %439 = vadd.xlane.f32.xlu1 %v644_v14 }
 0x39a   :  { %v646_v15 = vpop.eup %645 }
 0x39b   :  { %441 = vadd.xlane.f32.xlu1 %v646_v15 }
 0x424   :  { %v440_v16 = vpop.xlane.xlu1 %439 }
 0x425   :  { %647 = vrcp.f32 %v440_v16 }
 0x428   :  { %v442_v17 = vpop.xlane.xlu1 %441 }
 0x429   :  { %649 = vrcp.f32 %v442_v17 }
 0x42f   :  { %v648_v18 = vpop.eup %647 }
 0x430   :  { %v444_v19 = vmul.f32 %v648_v18, %v644_v14 }
 0x432   :  { %v461_v20 = vsel %vm423_vm1, %v444_v19, %v459_v5 }
 0x433   :  { %v650_v21 = vpop.eup %649  ;;  %463 = vst [vmem:[#allocation10] sm:$0xff] %v461_v20 }
 0x434   :  { %v446_v22 = vmul.f32 %v650_v21, %v646_v15 }
 0x436   :  { %v462_v23 = vsel %vm423_vm1, %v446_v22, %v460_v7 }
 0x437   :  { %464 = vst [vmem:[#allocation10 + $0x8] sm:$0xff] %v462_v23 }
 0x438   :  { %750 = shalt.err (!%p747_p8)
}
 0x439   :  { %s751_s24 = scalar_lea.hbm %s952_s5, 256 }
 0x43a   :  { %p752_p9 = scmp.ne.s32.totalorder %s952_s5, %s751_s24  ;;  %p755_p10 = scmp.lt.u32.totalorder %s751_s24, %s952_s5 }
 0x43c   :  { %p757_p11 = pnand %p755_p10, %p752_p9 }
 0x43e   :  { %760 = shalt.err (!%p757_p11)
}
 0x43f   :  { %s778_s29 = smov 128   ;;  %s779_s0 = smov 8  }
 0x440   :  { %476 = dma.vmem_to_hbm [thread:$0]  %s471_s19, 256, %s952_s5, [#allocation4], %s778_s29, %s778_s29, %s779_s0  }
 0x441   :  { %767 = dma.done.wait [#allocation4], 256  }
 0x442   :  { %768 = vsyncadd [#allocation4], 4294967040 }
 0x443   :  { %480 = vsyncpa [#allocation3], 1 }
 0x444   :  { %481 = vsyncpa [#allocation6], 1 }
 0x445   :  { %482 = vsyncpa [#allocation9], 1 }
 0x446   :  { %483 = vsyncpa [#allocation4], 1 }

// kernel: tpu_custom_call.1
= control target key start
LH: loop header
LB: loop body
LE: loop exit
PB: predicated region body
PF: predicated region fallthrough
CT: control target
= control target key end

     0   :  { %10 = vsyncpa [#allocation3], 0  ;;  %s947_s0 = inlined_call_operand.hbm [shape: bf16[16,128], index: 0, kind: input, shape index: {}]   ;;  %s948_s1 = inlined_call_operand.hbm [shape: bf16[128,128], index: 1, kind: input, shape index: {}]   ;;  %s949_s2 = inlined_call_operand.hbm [shape: bf16[128,128], index: 2, kind: input, shape index: {}]   ;;  %s950_s3 = inlined_call_operand.hbm [shape: bf16[128,128], index: 3, kind: input, shape index: {}]   ;;  %s951_s4 = inlined_call_operand.vmem [shape: f32[3,128], index: 4, kind: input, shape index: {}]   ;;  %s952_s5 = inlined_call_operand.hbm [shape: f32[16,128], index: 5, kind: output, shape index: {}]  }
   0x1   :  { %11 = vsyncpa [#allocation6], 0 }
   0x2   :  { %12 = vsyncpa [#allocation9], 0 }
   0x3   :  { %13 = vsyncpa [#allocation4], 0  ;;  %s769_s18 = smov [#allocation5]   ;;  %s770_s20 = smov [#allocation2]  }
   0x4   :  { %s31_s19 = sshll.u32 %s769_s18, 4  ;;  %s19_s21 = sshll.u32 %s770_s20, 4  ;;  %s32_s19 = int_to_ptr.vmem [resolvable:$true] %s31_s19  ;;  %s810_s21 = int_to_ptr.vmem [resolvable:$true] %s19_s21 }
   0x5   :  { %s651_s24 = scalar_lea.hbm %s948_s1, 1024 }
   0x6   :  { %p652_p0 = scmp.ne.s32.totalorder %s948_s1, %s651_s24  ;;  %p655_p1 = scmp.lt.u32.totalorder %s651_s24, %s948_s1 }
   0x8   :  { %p657_p2 = pnand %p655_p1, %p652_p0 }
   0xa   :  { %660 = shalt.err (!%p657_p2)
}
   0xb   :  { %s661_s29 = scalar_lea.vmem %s32_s19, 1024  ;;  %p666_p4 = scmp.lt.s32.totalorder %s32_s19, %s32_s19 }
   0xc   :  { %p662_p3 = scmp.ne.s32.totalorder %s32_s19, %s661_s29  ;;  %p667_p5 = scmp.lt.s32.totalorder %s661_s29, %s661_s29 }
   0xe   :  { %p668_p6 = por %p667_p5, %p666_p4 }
  0x10   :  { %p669_p7 = pnand %p668_p6, %p662_p3 }
  0x12   :  { %672 = shalt.err (!%p669_p7)
}
  0x13   :  { %s771_s30 = smov 64   ;;  %s772_s6 = smov 4  }
  0x14   :  { %37 = dma.hbm_to_vmem [thread:$0]  %s948_s1, 1024, %s32_s19, [#allocation6], %s771_s30, %s771_s30, %s772_s6  }
  0x15   :  { %s673_s11 = scalar_lea.hbm %s947_s0, 128 }
  0x16   :  { %p674_p8 = scmp.ne.s32.totalorder %s947_s0, %s673_s11  ;;  %p677_p9 = scmp.lt.u32.totalorder %s673_s11, %s947_s0 }
  0x18   :  { %p679_p10 = pnand %p677_p9, %p674_p8 }
  0x1a   :  { %682 = shalt.err (!%p679_p10)
}
  0x1b   :  { %s683_s16 = scalar_lea.vmem %s810_s21, 128  ;;  %p688_p12 = scmp.lt.s32.totalorder %s810_s21, %s810_s21 }
  0x1c   :  { %p684_p11 = scmp.ne.s32.totalorder %s810_s21, %s683_s16  ;;  %p689_p13 = scmp.lt.s32.totalorder %s683_s16, %s683_s16 }
  0x1e   :  { %p690_p0 = por %p689_p13, %p688_p12 }
  0x20   :  { %p691_p1 = pnand %p690_p0, %p684_p11 }
  0x22   :  { %694 = shalt.err (!%p691_p1)
}
  0x23   :  { %25 = dma.hbm_to_vmem [thread:$0]  %s947_s0, 128, %s810_s21, [#allocation3], %s771_s30, %s771_s30, %s772_s6  }
  0x24   :  { %s773_s18 = smov [#allocation7]   ;;  %s774_s20 = smov [#allocation8]  }
  0x25   :  { %s43_s19 = sshll.u32 %s773_s18, 4  ;;  %s55_s22 = sshll.u32 %s774_s20, 4  ;;  %s44_s19 = int_to_ptr.vmem [resolvable:$true] %s43_s19  ;;  %s847_s22 = int_to_ptr.vmem [resolvable:$true] %s55_s22 }
  0x26   :  { %s695_s25 = scalar_lea.hbm %s949_s2, 1024 }
  0x27   :  { %p696_p2 = scmp.ne.s32.totalorder %s949_s2, %s695_s25  ;;  %p699_p3 = scmp.lt.u32.totalorder %s695_s25, %s949_s2 }
  0x29   :  { %p701_p4 = pnand %p699_p3, %p696_p2 }
  0x2b   :  { %704 = shalt.err (!%p701_p4)
}
  0x2c   :  { %s705_s0 = scalar_lea.vmem %s44_s19, 1024  ;;  %p710_p6 = scmp.lt.s32.totalorder %s44_s19, %s44_s19 }
  0x2d   :  { %p706_p5 = scmp.ne.s32.totalorder %s44_s19, %s705_s0  ;;  %p711_p7 = scmp.lt.s32.totalorder %s705_s0, %s705_s0 }
  0x2f   :  { %p712_p8 = por %p711_p7, %p710_p6 }
  0x31   :  { %p713_p9 = pnand %p712_p8, %p706_p5 }
  0x33   :  { %716 = shalt.err (!%p713_p9)
}
  0x34   :  { %49 = dma.hbm_to_vmem [thread:$0]  %s949_s2, 1024, %s44_s19, [#allocation6], %s771_s30, %s771_s30, %s772_s6  }
  0x35   :  { %s717_s10 = scalar_lea.hbm %s950_s3, 1024 }
  0x36   :  { %p718_p10 = scmp.ne.s32.totalorder %s950_s3, %s717_s10  ;;  %p721_p11 = scmp.lt.u32.totalorder %s717_s10, %s950_s3 }
  0x38   :  { %p723_p12 = pnand %p721_p11, %p718_p10 }
  0x3a   :  { %726 = shalt.err (!%p723_p12)
}
  0x3b   :  { %s727_s15 = scalar_lea.vmem %s847_s22, 1024  ;;  %p732_p0 = scmp.lt.s32.totalorder %s847_s22, %s847_s22 }
  0x3c   :  { %p728_p13 = scmp.ne.s32.totalorder %s847_s22, %s727_s15  ;;  %p733_p1 = scmp.lt.s32.totalorder %s727_s15, %s727_s15 }
  0x3e   :  { %p734_p2 = por %p733_p1, %p732_p0 }
  0x40   :  { %p735_p3 = pnand %p734_p2, %p728_p13 }
  0x42   :  { %738 = shalt.err (!%p735_p3)
}
  0x43   :  { %61 = dma.hbm_to_vmem [thread:$0]  %s950_s3, 1024, %s847_s22, [#allocation9], %s771_s30, %s771_s30, %s772_s6  }
  0x44   :  { %761 = dma.done.wait [#allocation3], 128  }
  0x45   :  { %762 = vsyncadd [#allocation3], 4294967168 }
  0x46   :  { %763 = dma.done.wait [#allocation6], 2048  }
  0x47   :  { %764 = vsyncadd [#allocation6], 4294965248 }
  0x48   :  { %765 = dma.done.wait [#allocation9], 1024  }
  0x49   :  { %766 = vsyncadd [#allocation9], 4294966272  ;;  %v775_v0 = vmov 0.0   ;;  %vm776_vm0 = vmmov 0   ;;  %v610_v1 = vld [vmem:[#allocation5] sm:$0xff]   ;;  %v611_v2 = vld [vmem:[#allocation5 + $0x8] sm:$0xff]   ;;  %v421_v46 = vlaneseq }
  0x4a   :  { %539 = vmatprep.subr.bf16.mxu0 %v775_v0  ;;  %555 = vmatprep.mubr.msk.bf16.mxu0 %vm776_vm0, %v775_v0  ;;  %v612_v3 = vld [vmem:[#allocation5 + $0x10] sm:$0xff]   ;;  %v619_v4 = vld [vmem:[#allocation7] sm:$0xff]   ;;  %v613_v5 = vld [vmem:[#allocation5 + $0x18] sm:$0xff]  }
  0x4b   :  { %559 = vmatprep.subr.bf16.mxu1 %v775_v0  ;;  %575 = vmatprep.mubr.msk.bf16.mxu1 %vm776_vm0, %v775_v0  ;;  %v620_v6 = vld [vmem:[#allocation7 + $0x8] sm:$0xff]   ;;  %v614_v7 = vld [vmem:[#allocation5 + $0x20] sm:$0xff]   ;;  %v621_v8 = vld [vmem:[#allocation7 + $0x10] sm:$0xff]   ;;  %v422_v47 = vand.u32 127, %v421_v46 }
  0x4c   :  { %540 = vmatpush3.bf16.msra.mxu0 %v610_v1  ;;  %560 = vmatpush3.bf16.msra.mxu1 %v619_v4  ;;  %v615_v9 = vld [vmem:[#allocation5 + $0x28] sm:$0xff]   ;;  %v622_v10 = vld [vmem:[#allocation7 + $0x18] sm:$0xff]   ;;  %v616_v11 = vld [vmem:[#allocation5 + $0x30] sm:$0xff]  }
  0x4d   :  { %541 = vmatprep.subr.bf16.mxu0 %v775_v0  ;;  %561 = vmatprep.subr.bf16.mxu1 %v775_v0  ;;  %v623_v12 = vld [vmem:[#allocation7 + $0x20] sm:$0xff]   ;;  %v617_v13 = vld [vmem:[#allocation5 + $0x38] sm:$0xff]   ;;  %v624_v14 = vld [vmem:[#allocation7 + $0x28] sm:$0xff]   ;;  %vm423_vm1 = vcmp.lt.s32.totalorder %v422_v47, 3  ;;  %vm424_vm2 = vcmp.ge.s32.totalorder %v422_v47, 9  ;;  %vm425_vm3 = vcmp.lt.s32.totalorder %v422_v47, 15 }
  0x4e   :  { %v618_v15 = vld [vmem:[#allocation2] sm:$0xff]   ;;  %v625_v16 = vld [vmem:[#allocation7 + $0x30] sm:$0xff]   ;;  %v627_v18 = vld [vmem:[#allocation8] sm:$0xff]  }
  0x4f   :  { %v626_v17 = vld [vmem:[#allocation7 + $0x38] sm:$0xff]   ;;  %v628_v19 = vld [vmem:[#allocation8 + $0x8] sm:$0xff]   ;;  %v629_v20 = vld [vmem:[#allocation8 + $0x10] sm:$0xff]  }
  0x50   :  { %542 = vmatpush3.bf16.msra.mxu0 %v611_v2  ;;  %562 = vmatpush3.bf16.msra.mxu1 %v620_v6  ;;  %v630_v21 = vld [vmem:[#allocation8 + $0x18] sm:$0xff]   ;;  %v631_v22 = vld [vmem:[#allocation8 + $0x20] sm:$0xff]   ;;  %v632_v23 = vld [vmem:[#allocation8 + $0x28] sm:$0xff]  }
  0x51   :  { %543 = vmatprep.subr.bf16.mxu0 %v775_v0  ;;  %563 = vmatprep.subr.bf16.mxu1 %v775_v0  ;;  %v484_v24 = vld [vmem:[%s951_s4] ss:$0 sm:$0xff]  ;;  %v633_v34 = vld [vmem:[#allocation8 + $0x30] sm:$0xff]   ;;  %v494_v36 = vld [vmem:[%s951_s4 + $0x1] ss:$0 sm:$0xff] }
  0x52   :  { %v634_v35 = vld [vmem:[#allocation8 + $0x38] sm:$0xff]   ;;  %vm925_vm4 = vmand %vm424_vm2, %vm425_vm3 }
  0x53   :  { %v503_v48 = vld [vmem:[%s951_s4 + $0x2] ss:$0 sm:$0xff]  ;;  %s777_s4 = smov [#allocation10]  }
  0x54   :  { %544 = vmatpush3.bf16.msra.mxu0 %v612_v3  ;;  %564 = vmatpush3.bf16.msra.mxu1 %v621_v8  ;;  %s470_s19 = sshll.u32 %s777_s4, 4  ;;  %s471_s19 = int_to_ptr.vmem [resolvable:$true] %s470_s19 }
  0x55   :  { %545 = vmatprep.subr.bf16.mxu0 %v775_v0  ;;  %565 = vmatprep.subr.bf16.mxu1 %v775_v0  ;;  %s739_s20 = scalar_lea.vmem %s471_s19, 256  ;;  %p744_p5 = scmp.lt.s32.totalorder %s471_s19, %s471_s19 }
  0x56   :  { %p740_p4 = scmp.ne.s32.totalorder %s471_s19, %s739_s20  ;;  %p745_p6 = scmp.lt.s32.totalorder %s739_s20, %s739_s20 }
  0x58   :  { %546 = vmatpush3.bf16.msra.mxu0 %v613_v5  ;;  %566 = vmatpush3.bf16.msra.mxu1 %v622_v10  ;;  %p746_p7 = por %p745_p6, %p744_p5 }
  0x59   :  { %547 = vmatprep.subr.bf16.mxu0 %v775_v0  ;;  %567 = vmatprep.subr.bf16.mxu1 %v775_v0 }
  0x5a   :  { %p747_p8 = pnand %p746_p7, %p740_p4 }
  0x5c   :  { %548 = vmatpush3.bf16.msra.mxu0 %v614_v7  ;;  %568 = vmatpush3.bf16.msra.mxu1 %v623_v12 }
  0x5d   :  { %549 = vmatprep.subr.bf16.mxu0 %v775_v0  ;;  %569 = vmatprep.subr.bf16.mxu1 %v775_v0 }
  0x60   :  { %550 = vmatpush3.bf16.msra.mxu0 %v615_v9  ;;  %570 = vmatpush3.bf16.msra.mxu1 %v624_v14 }
  0x61   :  { %551 = vmatprep.subr.bf16.mxu0 %v775_v0  ;;  %571 = vmatprep.subr.bf16.mxu1 %v775_v0 }
  0x64   :  { %552 = vmatpush3.bf16.msra.mxu0 %v616_v11  ;;  %572 = vmatpush3.bf16.msra.mxu1 %v625_v16 }
  0x65   :  { %553 = vmatprep.subr.bf16.mxu0 %v775_v0  ;;  %573 = vmatprep.subr.bf16.mxu1 %v775_v0 }
  0x68   :  { %554 = vmatpush3.bf16.msra.mxu0 %v617_v13  ;;  %574 = vmatpush3.bf16.msra.mxu1 %v626_v17 }
  0x69   :  { %579 = vmatprep.subr.bf16.mxu0 %v775_v0 }
  0x6b   :  { %556 = vmatmul.mubr.bf16.vlgmr.msra.gmra.mrb[0].mxu0 %v618_v15 }
  0x6c   :  { %595 = vmatprep.mubr.msk.bf16.mxu0 %vm776_vm0, %v775_v0  ;;  %580 = vmatpush3.bf16.msra.mxu0 %v627_v18 }
  0x6d   :  { %581 = vmatprep.subr.bf16.mxu0 %v775_v0 }
  0x70   :  { %582 = vmatpush3.bf16.msra.mxu0 %v628_v19 }
  0x71   :  { %583 = vmatprep.subr.bf16.mxu0 %v775_v0 }
  0x74   :  { %584 = vmatpush3.bf16.msra.mxu0 %v629_v20 }
  0x75   :  { %585 = vmatprep.subr.bf16.mxu0 %v775_v0 }
  0x78   :  { %586 = vmatpush3.bf16.msra.mxu0 %v630_v21 }
  0x79   :  { %587 = vmatprep.subr.bf16.mxu0 %v775_v0 }
  0x7c   :  { %588 = vmatpush3.bf16.msra.mxu0 %v631_v22 }
  0x7d   :  { %589 = vmatprep.subr.bf16.mxu0 %v775_v0 }
  0x80   :  { %590 = vmatpush3.bf16.msra.mxu0 %v632_v23 }
  0x81   :  { %591 = vmatprep.subr.bf16.mxu0 %v775_v0 }
  0x84   :  { %592 = vmatpush3.bf16.msra.mxu0 %v633_v34 }
  0x85   :  { %593 = vmatprep.subr.bf16.mxu0 %v775_v0 }
  0x88   :  { %594 = vmatpush3.bf16.msra.mxu0 %v634_v35 }
 0x13e   :  { %v188_v25 = vpop.f32.mrb[0].mxu0 }
 0x13f   :  { %v189_v26 = vadd.f32 %v484_v24, %v188_v25  ;;  %v557_v27 = vpop.f32.mrb[1].mxu0 }
 0x140   :  { %v191_v28 = vpop.f32.mrb[2].mxu0 }
 0x141   :  { %v192_v29 = vadd.f32 %v484_v24, %v191_v28  ;;  %v558_v30 = vpop.f32.mrb[3].mxu0  ;;  %v195_v31 = vmax.f32 %v189_v26, 0.0 }
 0x143   :  { %v196_v32 = vmax.f32 %v192_v29, 0.0 }
 0x145   :  { %v197_v33 = vpack.c.bf16 %v196_v32, %v195_v31 }
 0x147   :  { %576 = vmatmul.mubr.bf16.vlgmr.msra.gmra.mrb[0].mxu1 %v197_v33 }
 0x21a   :  { %v301_v37 = vpop.f32.mrb[0].mxu1 }
 0x21b   :  { %v302_v38 = vadd.f32 %v494_v36, %v301_v37  ;;  %v577_v39 = vpop.f32.mrb[1].mxu1 }
 0x21c   :  { %v304_v40 = vpop.f32.mrb[2].mxu1 }
 0x21d   :  { %v305_v41 = vadd.f32 %v494_v36, %v304_v40  ;;  %v578_v42 = vpop.f32.mrb[3].mxu1  ;;  %v308_v43 = vmax.f32 %v302_v38, 0.0 }
 0x21f   :  { %v309_v44 = vmax.f32 %v305_v41, 0.0 }
 0x221   :  { %v310_v45 = vpack.c.bf16 %v309_v44, %v308_v43 }
 0x223   :  { %596 = vmatmul.mubr.bf16.vlgmr.msra.gmra.mrb[4].mxu0 %v310_v45 }
 0x2f6   :  { %v414_v49 = vpop.f32.mrb[4].mxu0 }
 0x2f7   :  { %v415_v50 = vadd.f32 %v503_v48, %v414_v49  ;;  %v597_v51 = vpop.f32.mrb[5].mxu0 }
 0x2f8   :  { %v417_v52 = vpop.f32.mrb[6].mxu0 }
 0x2f9   :  { %635 = vtanh.f32 %v415_v50  ;;  %v418_v53 = vadd.f32 %v503_v48, %v417_v52  ;;  %v598_v54 = vpop.f32.mrb[7].mxu0  ;;  %v427_v55 = vsel %vm423_vm1, %v415_v50, -inf }
 0x2fa   :  { %429 = vmax.xlane.f32.xlu0 %v427_v55 }
 0x2fb   :  { %637 = vtanh.f32 %v418_v53  ;;  %v428_v56 = vsel %vm423_vm1, %v418_v53, -inf }
 0x2fe   :  { %431 = vmax.xlane.f32.xlu0 %v428_v56 }
 0x303   :  { %v636_v57 = vpop.eup %635 }
 0x304   :  { %v449_v58 = vadd.f32 1.0, %v636_v57 }
 0x305   :  { %v638_v59 = vpop.eup %637 }
 0x306   :  { %v451_v60 = vmul.f32 97.5, %v449_v58  ;;  %v450_v61 = vadd.f32 1.0, %v638_v59 }
 0x308   :  { %v453_v62 = vadd.f32 5.0, %v451_v60  ;;  %v452_v63 = vmul.f32 97.5, %v450_v61 }
 0x30a   :  { %v455_v0 = vmul.f32 1.442695, %v453_v62  ;;  %v454_v1 = vadd.f32 5.0, %v452_v63 }
 0x30c   :  { %639 = vpow2.f32 %v455_v0  ;;  %v457_v2 = vmul.f32 1.442695, %v454_v1 }
 0x30e   :  { %641 = vpow2.f32 %v457_v2 }
 0x316   :  { %v640_v4 = vpop.eup %639 }
 0x317   :  { %v459_v5 = vsel %vm925_vm4, %v640_v4, %v453_v62 }
 0x318   :  { %v642_v6 = vpop.eup %641 }
 0x319   :  { %v460_v7 = vsel %vm925_vm4, %v642_v6, %v454_v1 }
 0x387   :  { %v430_v8 = vpop.xlane.xlu0 %429 }
 0x388   :  { %v433_v9 = vsub.f32 %v427_v55, %v430_v8 }
 0x38a   :  { %v435_v10 = vmul.f32 1.442695, %v433_v9 }
 0x38b   :  { %v432_v11 = vpop.xlane.xlu0 %431 }
 0x38c   :  { %643 = vpow2.f32 %v435_v10  ;;  %v434_v12 = vsub.f32 %v428_v56, %v432_v11 }
 0x38e   :  { %v437_v13 = vmul.f32 1.442695, %v434_v12 }
 0x390   :  { %645 = vpow2.f32 %v437_v13 }
 0x396   :  { %v644_v14 = vpop.eup %643 }
 0x397   :  { %439 = vadd.xlane.f32.xlu1 %v644_v14 }
 0x39a   :  { %v646_v15 = vpop.eup %645 }
 0x39b   :  { %441 = vadd.xlane.f32.xlu1 %v646_v15 }
 0x424   :  { %v440_v16 = vpop.xlane.xlu1 %439 }
 0x425   :  { %647 = vrcp.f32 %v440_v16 }
 0x428   :  { %v442_v17 = vpop.xlane.xlu1 %441 }
 0x429   :  { %649 = vrcp.f32 %v442_v17 }
 0x42f   :  { %v648_v18 = vpop.eup %647 }
 0x430   :  { %v444_v19 = vmul.f32 %v648_v18, %v644_v14 }
 0x432   :  { %v461_v20 = vsel %vm423_vm1, %v444_v19, %v459_v5 }
 0x433   :  { %v650_v21 = vpop.eup %649  ;;  %463 = vst [vmem:[#allocation10] sm:$0xff] %v461_v20 }
 0x434   :  { %v446_v22 = vmul.f32 %v650_v21, %v646_v15 }
 0x436   :  { %v462_v23 = vsel %vm423_vm1, %v446_v22, %v460_v7 }
 0x437   :  { %464 = vst [vmem:[#allocation10 + $0x8] sm:$0xff] %v462_v23 }
 0x438   :  { %750 = shalt.err (!%p747_p8)
}
 0x439   :  { %s751_s24 = scalar_lea.hbm %s952_s5, 256 }
 0x43a   :  { %p752_p9 = scmp.ne.s32.totalorder %s952_s5, %s751_s24  ;;  %p755_p10 = scmp.lt.u32.totalorder %s751_s24, %s952_s5 }
 0x43c   :  { %p757_p11 = pnand %p755_p10, %p752_p9 }
 0x43e   :  { %760 = shalt.err (!%p757_p11)
}
 0x43f   :  { %s778_s29 = smov 128   ;;  %s779_s0 = smov 8  }
 0x440   :  { %476 = dma.vmem_to_hbm [thread:$0]  %s471_s19, 256, %s952_s5, [#allocation4], %s778_s29, %s778_s29, %s779_s0  }
 0x441   :  { %767 = dma.done.wait [#allocation4], 256  }
 0x442   :  { %768 = vsyncadd [#allocation4], 4294967040 }
 0x443   :  { %480 = vsyncpa [#allocation3], 1 }
 0x444   :  { %481 = vsyncpa [#allocation6], 1 }
 0x445   :  { %482 = vsyncpa [#allocation9], 1 }
 0x446   :  { %483 = vsyncpa [#allocation4], 1 }

</bundles_post_ra>
